<compile_context>
chip_gen: v5e
topology: v5e:2x2
jax: 0.10.0
libtpu: 0.0.40
codegen_flags: <defaults>
</compile_context>

<pallas_src>
import functools

import jax
import jax.numpy as jnp
from jax import lax
from jax.experimental import pallas as pl
from jax.experimental.pallas import tpu as pltpu


# ----------------------------------------------------------------------------
# Pallas kernel: fused (1x1 conv + folded BN + ReLU) x num_layers per neighbor
# slab, folded into a running max over the neighbor (leading K) axis.
# Block shapes: x (K, C_in, TS) bf16, params full, out (C_out, TS).
# ----------------------------------------------------------------------------
def make_mlp_max_kernel(num_layers):
    def kernel(x_ref, *rest):
        o_ref = rest[-1]            # (C_out, TS)
        param_refs = rest[:-1]      # w0, b0, w1, b1, ...  (w bf16 [C_out,C_in], b f32 [C_out,1])
        K = x_ref.shape[0]

        def mlp_one_neighbor(k):
            h = x_ref[k]                                    # (C_prev, TS) bf16, lane-dense
            for i in range(num_layers):
                w = param_refs[2 * i][...]                  # (C_next, C_prev) bf16
                b = param_refs[2 * i + 1][...]              # (C_next, 1)      f32
                # MXU matmul with TS as the lane/N dim; f32 accumulation.
                h = jnp.dot(w, h.astype(w.dtype),
                            preferred_element_type=jnp.float32) + b
                h = jnp.maximum(h, 0.0)                     # ReLU in f32
                if i + 1 < num_layers:
                    h = h.astype(jnp.bfloat16)              # bf16 operand for next matmul
            return h                                        # (C_out, TS) f32

        # Running max over neighbors == torch.max(new_points, 2)[0]; keeps the
        # live f32 working set at one (C_out, TS) slab instead of K of them.
        acc = mlp_one_neighbor(0)
        for k in range(1, K):
            acc = jnp.maximum(acc, mlp_one_neighbor(k))
        o_ref[...] = acc.astype(o_ref.dtype)

    return kernel


def _choose_s_tile(S, B, K, c_in, c_out, *, in_elt_bytes=2, out_elt_bytes=4):
    """Pick the S (lane) tile.  Constraints:
       - multiple of 128 dividing S, or the full S (BlockSpec layout rule);
       - each grid step should move >= ~1 MiB of HBM traffic so the ~0.35 us
         per-step pipeline overhead stops dominating;
       - double-buffered blocks + f32 working set must fit a per-generation
         VMEM budget (v7x has only 64 MiB physical);
       - keep >= ~8 grid steps so v7x's 2 TensorCores stay busy and the
         double-buffer has enough steps to hide DMA."""
    if S % 128 != 0:
        return S                       # tiny inputs: single full-S block
    try:
        vmem_cap = pltpu.get_tpu_info().vmem_capacity_bytes
    except Exception:
        vmem_cap = 64 << 20            # conservative (v7x)
    budget = min(24 << 20, vmem_cap // 2)

    per_point_bytes = K * c_in * in_elt_bytes + c_out * out_elt_bytes
    target_bytes = 1 << 20

    cands = [t for t in range(128, S + 1, 128) if S % t == 0]
    best = cands[0]
    for t in cands:
        step_vmem = (2 * K * c_in * t * in_elt_bytes      # double-buffered input block
                     + 2 * c_out * t * out_elt_bytes      # double-buffered output block
                     + 4 * c_out * t * 4)                 # f32 working intermediates
        if t != cands[0] and step_vmem > budget:
            break
        if t != cands[0] and B * (S // t) < 8:
            break
        best = t
        if t * per_point_bytes >= target_bytes:
            break
    return best


def mlp_max_pallas(grouped_cf, params, *, out_dtype=jnp.float32):
    """grouped_cf: [B, K, C_in, S] bf16 (neighbor-major, S lane-dense);
       params: list of (W_eff[C_out, C_in] bf16, b_eff[C_out, 1] f32).
       Returns [B, C_last, S]."""
    B, K, C_in, S = grouped_cf.shape
    num_layers = len(params)
    C_out = params[-1][0].shape[0]
    flat_params = [p for wb in params for p in wb]

    TS = _choose_s_tile(S, B, K, C_in, C_out)
    grid = (B, S // TS)

    in_specs = [pl.BlockSpec((None, K, C_in, TS), lambda b, s: (b, 0, 0, s))]
    for p in flat_params:
        in_specs.append(pl.BlockSpec(p.shape, lambda b, s, nd=p.ndim: (0,) * nd))

    # Per-step VMEM estimate (2 buffers per pipelined stream + f32 working set);
    # the limit is derived from it and capped well inside v7x's 64 MiB.
    step_bytes = (2 * K * C_in * TS * grouped_cf.dtype.itemsize
                  + 2 * C_out * TS * jnp.dtype(out_dtype).itemsize
                  + 4 * C_out * TS * 4)
    vmem_limit = int(min(32 << 20, max(16 << 20, 2 * step_bytes)))

    # TODO(synk): fuse the kNN gather into this kernel (scalar-prefetch idx +
    # manual DMA gather from HBM xy/points) so the K-times-expanded grouped
    # tensor never round-trips HBM.
    return pl.pallas_call(
        make_mlp_max_kernel(num_layers),
        out_shape=jax.ShapeDtypeStruct((B, C_out, S), out_dtype),
        grid=grid,
        in_specs=in_specs,
        out_specs=pl.BlockSpec((None, C_out, TS), lambda b, s: (b, 0, s)),
        compiler_params=pltpu.CompilerParams(
            dimension_semantics=("parallel", "parallel"),
            vmem_limit_bytes=vmem_limit,
        ),
    )(grouped_cf, *flat_params)


# ----------------------------------------------------------------------------
# Plain-JAX glue (sampling / grouping)
# ----------------------------------------------------------------------------
def square_distance(src, dst):
    # src [B,N,C], dst [B,M,C] -> [B,N,M]; matmul form (no [B,N,M,C] intermediate).
    s2 = jnp.sum(src * src, axis=-1)[:, :, None]
    d2 = jnp.sum(dst * dst, axis=-1)[:, None, :]
    cross = jnp.einsum("bnc,bmc->bnm", src, dst)
    return s2 + d2 - 2.0 * cross


def index_points(points, idx):
    # points [B,N,C], idx [B, ...] -> [B, ..., C]
    B = points.shape[0]
    C = points.shape[-1]
    raw_shape = idx.shape
    flat = idx.reshape(B, -1)
    gather_idx = jnp.broadcast_to(flat[..., None], (B, flat.shape[1], C))
    gathered = jnp.take_along_axis(points, gather_idx, axis=1)
    return gathered.reshape(*raw_shape, C)


def farthest_point_sample(xy, npoint):
    # Deterministic initial point (index 0) instead of torch.randint, for reproducibility.
    B, N, _ = xy.shape
    batch_idx = jnp.arange(B)

    def body(i, carry):
        centroids, distance, farthest = carry
        centroids = centroids.at[:, i].set(farthest)
        centroid = xy[batch_idx, farthest][:, None, :]        # (B,1,2)
        dist = jnp.sum((xy - centroid) ** 2, axis=-1)          # (B,N)
        distance = jnp.minimum(distance, dist)
        farthest = jnp.argmax(distance, axis=-1).astype(jnp.int32)
        return centroids, distance, farthest

    centroids = jnp.zeros((B, npoint), jnp.int32)
    distance = jnp.full((B, N), 1e10, jnp.float32)
    farthest = jnp.zeros((B,), jnp.int32)
    centroids, _, _ = lax.fori_loop(0, npoint, body, (centroids, distance, farthest))
    return centroids


def sample_and_group_knn(xy, points, nsample):
    """FPS + kNN grouping (knn=True branch).  Returns new_xy [B,S,2] and the
    grouped features in neighbor-major, channels-on-sublanes bf16 layout
    [B, K, 2+D, S] (S lane-dense for the kernel)."""
    B, N, _ = xy.shape
    npoint = N // 4

    fps_idx = farthest_point_sample(xy, npoint)                 # [B,S]
    new_xy = index_points(xy, fps_idx)                          # [B,S,2]

    # kNN: nsample smallest squared distances via top_k (cheaper than argsort).
    dists = square_distance(new_xy, xy)                         # [B,S,N]
    _, idx = lax.top_k(-dists, nsample)                         # [B,S,K]

    # Gather in neighbor-major order so the kernel's neighbor max is a pure
    # elementwise reduction over the leading axis.
    idx_t = jnp.swapaxes(idx, 1, 2)                             # [B,K,S]
    grouped_xy = index_points(xy, idx_t)                        # [B,K,S,2]
    grouped_xy_norm = grouped_xy - new_xy[:, None, :, :]
    grouped_points = index_points(points, idx_t)                # [B,K,S,D]
    new_points = jnp.concatenate([grouped_xy_norm, grouped_points], axis=-1)  # [B,K,S,2+D]
    # Channels on sublanes, S on lanes (lane-dense kernel blocks).
    new_points_cf = jnp.swapaxes(new_points, -1, -2)            # [B,K,2+D,S]
    return new_xy, new_points_cf.astype(jnp.bfloat16)           # bf16 halves kernel DMA bytes


def transition_down_forward(xy, points, params, nsample, out_dtype=jnp.float32):
    """xy: [B,N,2], points: [B,N,D].  Returns (new_xy [B,N//4,2], feats [B,N//4,C_last])."""
    assert xy.ndim == 3
    new_xy, grouped_cf = sample_and_group_knn(xy, points, nsample)
    feats_cf = mlp_max_pallas(grouped_cf, params, out_dtype=out_dtype)   # [B,C_last,S]
    # Torch-shaped output [B, S, C_last] (cheap wrapper transpose).
    return new_xy, jnp.swapaxes(feats_cf, 1, 2)


def mlp_max_reference(grouped_cf, params):
    """Pure-JAX reference for the fused MLP + neighbor-max (f32 math on the
    same bf16 inputs/weights).  grouped_cf: [B,K,C_in,S] -> [B,C_last,S]."""
    h = grouped_cf.astype(jnp.float32)
    for w, b in params:
        h = jnp.einsum("oc,bkcs->bkos", w.astype(jnp.float32), h) + b.astype(jnp.float32)
        h = jnp.maximum(h, 0.0)
    return jnp.max(h, axis=1)


# ----------------------------------------------------------------------------
# Deterministic parameter init (Conv2d 1x1 weight/bias + BN folded to scale/shift)
# ----------------------------------------------------------------------------
def init_params(channels, key, eps=1e-5):
    params = []
    last = channels[0]
    for out_c in channels[1:]:
        key, kw, kb, kg, kbt, km, kv = jax.random.split(key, 7)
        w = jax.random.normal(kw, (out_c, last), jnp.float32) / jnp.sqrt(float(last))
        b = 0.1 * jax.random.normal(kb, (out_c,), jnp.float32)
        gamma = 1.0 + 0.1 * jax.random.normal(kg, (out_c,), jnp.float32)
        beta = 0.1 * jax.random.normal(kbt, (out_c,), jnp.float32)
        running_mean = 0.1 * jax.random.normal(km, (out_c,), jnp.float32)
        running_var = jnp.abs(jax.random.normal(kv, (out_c,), jnp.float32)) + 0.5
        # Fold inference-mode BN into the 1x1 conv.
        scale = gamma / jnp.sqrt(running_var + eps)
        w_eff = (w * scale[:, None]).astype(jnp.bfloat16)              # (C_out, C_in) bf16
        b_eff = (b * scale + beta - running_mean * scale)[:, None]     # (C_out, 1)    f32
        params.append((w_eff, b_eff.astype(jnp.float32)))
        last = out_c
    return params


if __name__ == "__main__":
    key = jax.random.PRNGKey(0)
    B, N, D = 2, 16, 4
    nneighbor = 8
    channels = (2 + D, 32, 32)   # in_channel must equal 2 + D

    kxy, kpts, kparams = jax.random.split(key, 3)
    xy = jax.random.normal(kxy, (B, N, 2), jnp.float32)
    points = jax.random.normal(kpts, (B, N, D), jnp.float32)
    params = init_params(channels, kparams)

    fwd = jax.jit(functools.partial(transition_down_forward, nsample=nneighbor))
    new_xy, new_feats = fwd(xy, points, params)
    jax.block_until_ready((new_xy, new_feats))

    assert new_xy.shape == (B, N // 4, 2)
    assert new_feats.shape == (B, N // 4, channels[-1])
    assert new_xy.dtype == jnp.float32 and new_feats.dtype == jnp.float32

    # Correctness check against a pure-JAX reference (loose tolerance: the
    # kernel uses bf16 inter-layer activations / weights).
    _, grouped = jax.jit(functools.partial(sample_and_group_knn, nsample=nneighbor))(xy, points)
    ref = jnp.swapaxes(mlp_max_reference(grouped, params), 1, 2)
    max_err = float(jnp.max(jnp.abs(new_feats - ref)))
    assert max_err < 1e-1, f"kernel vs reference mismatch: {max_err}"

    print("KERNEL_OK")
</pallas_src>

<mosaic_0001>
module attributes {stable_mosaic.version = 11 : i64} {
  func.func @kernel(%arg0: i32, %arg1: i32, %arg2: memref<1x8x6x4xbf16, #tpu.memory_space<vmem>>, %arg3: memref<32x6xbf16, #tpu.memory_space<vmem>>, %arg4: memref<32x1xf32, #tpu.memory_space<vmem>>, %arg5: memref<32x32xbf16, #tpu.memory_space<vmem>>, %arg6: memref<32x1xf32, #tpu.memory_space<vmem>>, %arg7: memref<1x32x4xf32, #tpu.memory_space<vmem>>) attributes {dimension_semantics = [#tpu.dimension_semantics<parallel>, #tpu.dimension_semantics<parallel>], iteration_bounds = array<i64: 2, 1>, scalar_prefetch = 0 : i64, scratch_operands = 0 : i64, tpu.core_type = #tpu.core_type<tc>, window_params = [{transform_indices = @transform_0, window_bounds = array<i64: 1, 8, 6, 4>}, {pipeline_mode = #tpu.pipeline_mode<synchronous>, transform_indices = @transform_1, window_bounds = array<i64: 32, 6>}, {pipeline_mode = #tpu.pipeline_mode<synchronous>, transform_indices = @transform_2, window_bounds = array<i64: 32, 1>}, {pipeline_mode = #tpu.pipeline_mode<synchronous>, transform_indices = @transform_3, window_bounds = array<i64: 32, 32>}, {pipeline_mode = #tpu.pipeline_mode<synchronous>, transform_indices = @transform_4, window_bounds = array<i64: 32, 1>}, {transform_indices = @transform_5, window_bounds = array<i64: 1, 32, 4>}]} {
    %c0 = arith.constant 0 : index
    %c0_0 = arith.constant 0 : index
    %c0_1 = arith.constant 0 : index
    %c0_2 = arith.constant 0 : index
    %0 = vector.load %arg2[%c0, %c0_0, %c0_1, %c0_2] : memref<1x8x6x4xbf16, #tpu.memory_space<vmem>>, vector<1x1x6x4xbf16>
    %1 = vector.shape_cast %0 : vector<1x1x6x4xbf16> to vector<6x4xbf16>
    %c0_3 = arith.constant 0 : index
    %c0_4 = arith.constant 0 : index
    %2 = vector.load %arg3[%c0_3, %c0_4] : memref<32x6xbf16, #tpu.memory_space<vmem>>, vector<32x6xbf16>
    %c0_5 = arith.constant 0 : index
    %c0_6 = arith.constant 0 : index
    %3 = vector.load %arg4[%c0_5, %c0_6] : memref<32x1xf32, #tpu.memory_space<vmem>>, vector<32x1xf32>
    %cst = arith.constant dense<0.000000e+00> : vector<32x4xf32>
    %4 = tpu.matmul %2, %1, %cst {dimension_numbers = #tpu.dot_dimension_numbers<[1], [0], [0], [1], [0, 0, 1, 1], [], []>} : vector<32x6xbf16>, vector<6x4xbf16>, vector<32x4xf32> -> vector<32x4xf32>
    %5 = vector.broadcast %3 : vector<32x1xf32> to vector<32x4xf32>
    %6 = arith.addf %4, %5 : vector<32x4xf32>
    %cst_7 = arith.constant 0.000000e+00 : f32
    %7 = vector.broadcast %cst_7 : f32 to vector<32x4xf32>
    %8 = arith.maximumf %6, %7 : vector<32x4xf32>
    %9 = arith.truncf %8 : vector<32x4xf32> to vector<32x4xbf16>
    %c0_8 = arith.constant 0 : index
    %c0_9 = arith.constant 0 : index
    %10 = vector.load %arg5[%c0_8, %c0_9] : memref<32x32xbf16, #tpu.memory_space<vmem>>, vector<32x32xbf16>
    %c0_10 = arith.constant 0 : index
    %c0_11 = arith.constant 0 : index
    %11 = vector.load %arg6[%c0_10, %c0_11] : memref<32x1xf32, #tpu.memory_space<vmem>>, vector<32x1xf32>
    %cst_12 = arith.constant dense<0.000000e+00> : vector<32x4xf32>
    %12 = tpu.matmul %10, %9, %cst_12 {dimension_numbers = #tpu.dot_dimension_numbers<[1], [0], [0], [1], [0, 0, 1, 1], [], []>} : vector<32x32xbf16>, vector<32x4xbf16>, vector<32x4xf32> -> vector<32x4xf32>
    %13 = vector.broadcast %11 : vector<32x1xf32> to vector<32x4xf32>
    %14 = arith.addf %12, %13 : vector<32x4xf32>
    %cst_13 = arith.constant 0.000000e+00 : f32
    %15 = vector.broadcast %cst_13 : f32 to vector<32x4xf32>
    %16 = arith.maximumf %14, %15 : vector<32x4xf32>
    %c0_14 = arith.constant 0 : index
    %c1 = arith.constant 1 : index
    %c0_15 = arith.constant 0 : index
    %c0_16 = arith.constant 0 : index
    %17 = vector.load %arg2[%c0_14, %c1, %c0_15, %c0_16] : memref<1x8x6x4xbf16, #tpu.memory_space<vmem>>, vector<1x1x6x4xbf16>
    %18 = vector.shape_cast %17 : vector<1x1x6x4xbf16> to vector<6x4xbf16>
    %c0_17 = arith.constant 0 : index
    %c0_18 = arith.constant 0 : index
    %19 = vector.load %arg3[%c0_17, %c0_18] : memref<32x6xbf16, #tpu.memory_space<vmem>>, vector<32x6xbf16>
    %c0_19 = arith.constant 0 : index
    %c0_20 = arith.constant 0 : index
    %20 = vector.load %arg4[%c0_19, %c0_20] : memref<32x1xf32, #tpu.memory_space<vmem>>, vector<32x1xf32>
    %cst_21 = arith.constant dense<0.000000e+00> : vector<32x4xf32>
    %21 = tpu.matmul %19, %18, %cst_21 {dimension_numbers = #tpu.dot_dimension_numbers<[1], [0], [0], [1], [0, 0, 1, 1], [], []>} : vector<32x6xbf16>, vector<6x4xbf16>, vector<32x4xf32> -> vector<32x4xf32>
    %22 = vector.broadcast %20 : vector<32x1xf32> to vector<32x4xf32>
    %23 = arith.addf %21, %22 : vector<32x4xf32>
    %cst_22 = arith.constant 0.000000e+00 : f32
    %24 = vector.broadcast %cst_22 : f32 to vector<32x4xf32>
    %25 = arith.maximumf %23, %24 : vector<32x4xf32>
    %26 = arith.truncf %25 : vector<32x4xf32> to vector<32x4xbf16>
    %c0_23 = arith.constant 0 : index
    %c0_24 = arith.constant 0 : index
    %27 = vector.load %arg5[%c0_23, %c0_24] : memref<32x32xbf16, #tpu.memory_space<vmem>>, vector<32x32xbf16>
    %c0_25 = arith.constant 0 : index
    %c0_26 = arith.constant 0 : index
    %28 = vector.load %arg6[%c0_25, %c0_26] : memref<32x1xf32, #tpu.memory_space<vmem>>, vector<32x1xf32>
    %cst_27 = arith.constant dense<0.000000e+00> : vector<32x4xf32>
    %29 = tpu.matmul %27, %26, %cst_27 {dimension_numbers = #tpu.dot_dimension_numbers<[1], [0], [0], [1], [0, 0, 1, 1], [], []>} : vector<32x32xbf16>, vector<32x4xbf16>, vector<32x4xf32> -> vector<32x4xf32>
    %30 = vector.broadcast %28 : vector<32x1xf32> to vector<32x4xf32>
    %31 = arith.addf %29, %30 : vector<32x4xf32>
    %cst_28 = arith.constant 0.000000e+00 : f32
    %32 = vector.broadcast %cst_28 : f32 to vector<32x4xf32>
    %33 = arith.maximumf %31, %32 : vector<32x4xf32>
    %34 = arith.maximumf %16, %33 : vector<32x4xf32>
    %c0_29 = arith.constant 0 : index
    %c2 = arith.constant 2 : index
    %c0_30 = arith.constant 0 : index
    %c0_31 = arith.constant 0 : index
    %35 = vector.load %arg2[%c0_29, %c2, %c0_30, %c0_31] : memref<1x8x6x4xbf16, #tpu.memory_space<vmem>>, vector<1x1x6x4xbf16>
    %36 = vector.shape_cast %35 : vector<1x1x6x4xbf16> to vector<6x4xbf16>
    %c0_32 = arith.constant 0 : index
    %c0_33 = arith.constant 0 : index
    %37 = vector.load %arg3[%c0_32, %c0_33] : memref<32x6xbf16, #tpu.memory_space<vmem>>, vector<32x6xbf16>
    %c0_34 = arith.constant 0 : index
    %c0_35 = arith.constant 0 : index
    %38 = vector.load %arg4[%c0_34, %c0_35] : memref<32x1xf32, #tpu.memory_space<vmem>>, vector<32x1xf32>
    %cst_36 = arith.constant dense<0.000000e+00> : vector<32x4xf32>
    %39 = tpu.matmul %37, %36, %cst_36 {dimension_numbers = #tpu.dot_dimension_numbers<[1], [0], [0], [1], [0, 0, 1, 1], [], []>} : vector<32x6xbf16>, vector<6x4xbf16>, vector<32x4xf32> -> vector<32x4xf32>
    %40 = vector.broadcast %38 : vector<32x1xf32> to vector<32x4xf32>
    %41 = arith.addf %39, %40 : vector<32x4xf32>
    %cst_37 = arith.constant 0.000000e+00 : f32
    %42 = vector.broadcast %cst_37 : f32 to vector<32x4xf32>
    %43 = arith.maximumf %41, %42 : vector<32x4xf32>
    %44 = arith.truncf %43 : vector<32x4xf32> to vector<32x4xbf16>
    %c0_38 = arith.constant 0 : index
    %c0_39 = arith.constant 0 : index
    %45 = vector.load %arg5[%c0_38, %c0_39] : memref<32x32xbf16, #tpu.memory_space<vmem>>, vector<32x32xbf16>
    %c0_40 = arith.constant 0 : index
    %c0_41 = arith.constant 0 : index
    %46 = vector.load %arg6[%c0_40, %c0_41] : memref<32x1xf32, #tpu.memory_space<vmem>>, vector<32x1xf32>
    %cst_42 = arith.constant dense<0.000000e+00> : vector<32x4xf32>
    %47 = tpu.matmul %45, %44, %cst_42 {dimension_numbers = #tpu.dot_dimension_numbers<[1], [0], [0], [1], [0, 0, 1, 1], [], []>} : vector<32x32xbf16>, vector<32x4xbf16>, vector<32x4xf32> -> vector<32x4xf32>
    %48 = vector.broadcast %46 : vector<32x1xf32> to vector<32x4xf32>
    %49 = arith.addf %47, %48 : vector<32x4xf32>
    %cst_43 = arith.constant 0.000000e+00 : f32
    %50 = vector.broadcast %cst_43 : f32 to vector<32x4xf32>
    %51 = arith.maximumf %49, %50 : vector<32x4xf32>
    %52 = arith.maximumf %34, %51 : vector<32x4xf32>
    %c0_44 = arith.constant 0 : index
    %c3 = arith.constant 3 : index
    %c0_45 = arith.constant 0 : index
    %c0_46 = arith.constant 0 : index
    %53 = vector.load %arg2[%c0_44, %c3, %c0_45, %c0_46] : memref<1x8x6x4xbf16, #tpu.memory_space<vmem>>, vector<1x1x6x4xbf16>
    %54 = vector.shape_cast %53 : vector<1x1x6x4xbf16> to vector<6x4xbf16>
    %c0_47 = arith.constant 0 : index
    %c0_48 = arith.constant 0 : index
    %55 = vector.load %arg3[%c0_47, %c0_48] : memref<32x6xbf16, #tpu.memory_space<vmem>>, vector<32x6xbf16>
    %c0_49 = arith.constant 0 : index
    %c0_50 = arith.constant 0 : index
    %56 = vector.load %arg4[%c0_49, %c0_50] : memref<32x1xf32, #tpu.memory_space<vmem>>, vector<32x1xf32>
    %cst_51 = arith.constant dense<0.000000e+00> : vector<32x4xf32>
    %57 = tpu.matmul %55, %54, %cst_51 {dimension_numbers = #tpu.dot_dimension_numbers<[1], [0], [0], [1], [0, 0, 1, 1], [], []>} : vector<32x6xbf16>, vector<6x4xbf16>, vector<32x4xf32> -> vector<32x4xf32>
    %58 = vector.broadcast %56 : vector<32x1xf32> to vector<32x4xf32>
    %59 = arith.addf %57, %58 : vector<32x4xf32>
    %cst_52 = arith.constant 0.000000e+00 : f32
    %60 = vector.broadcast %cst_52 : f32 to vector<32x4xf32>
    %61 = arith.maximumf %59, %60 : vector<32x4xf32>
    %62 = arith.truncf %61 : vector<32x4xf32> to vector<32x4xbf16>
    %c0_53 = arith.constant 0 : index
    %c0_54 = arith.constant 0 : index
    %63 = vector.load %arg5[%c0_53, %c0_54] : memref<32x32xbf16, #tpu.memory_space<vmem>>, vector<32x32xbf16>
    %c0_55 = arith.constant 0 : index
    %c0_56 = arith.constant 0 : index
    %64 = vector.load %arg6[%c0_55, %c0_56] : memref<32x1xf32, #tpu.memory_space<vmem>>, vector<32x1xf32>
    %cst_57 = arith.constant dense<0.000000e+00> : vector<32x4xf32>
    %65 = tpu.matmul %63, %62, %cst_57 {dimension_numbers = #tpu.dot_dimension_numbers<[1], [0], [0], [1], [0, 0, 1, 1], [], []>} : vector<32x32xbf16>, vector<32x4xbf16>, vector<32x4xf32> -> vector<32x4xf32>
    %66 = vector.broadcast %64 : vector<32x1xf32> to vector<32x4xf32>
    %67 = arith.addf %65, %66 : vector<32x4xf32>
    %cst_58 = arith.constant 0.000000e+00 : f32
    %68 = vector.broadcast %cst_58 : f32 to vector<32x4xf32>
    %69 = arith.maximumf %67, %68 : vector<32x4xf32>
    %70 = arith.maximumf %52, %69 : vector<32x4xf32>
    %c0_59 = arith.constant 0 : index
    %c4 = arith.constant 4 : index
    %c0_60 = arith.constant 0 : index
    %c0_61 = arith.constant 0 : index
    %71 = vector.load %arg2[%c0_59, %c4, %c0_60, %c0_61] : memref<1x8x6x4xbf16, #tpu.memory_space<vmem>>, vector<1x1x6x4xbf16>
    %72 = vector.shape_cast %71 : vector<1x1x6x4xbf16> to vector<6x4xbf16>
    %c0_62 = arith.constant 0 : index
    %c0_63 = arith.constant 0 : index
    %73 = vector.load %arg3[%c0_62, %c0_63] : memref<32x6xbf16, #tpu.memory_space<vmem>>, vector<32x6xbf16>
    %c0_64 = arith.constant 0 : index
    %c0_65 = arith.constant 0 : index
    %74 = vector.load %arg4[%c0_64, %c0_65] : memref<32x1xf32, #tpu.memory_space<vmem>>, vector<32x1xf32>
    %cst_66 = arith.constant dense<0.000000e+00> : vector<32x4xf32>
    %75 = tpu.matmul %73, %72, %cst_66 {dimension_numbers = #tpu.dot_dimension_numbers<[1], [0], [0], [1], [0, 0, 1, 1], [], []>} : vector<32x6xbf16>, vector<6x4xbf16>, vector<32x4xf32> -> vector<32x4xf32>
    %76 = vector.broadcast %74 : vector<32x1xf32> to vector<32x4xf32>
    %77 = arith.addf %75, %76 : vector<32x4xf32>
    %cst_67 = arith.constant 0.000000e+00 : f32
    %78 = vector.broadcast %cst_67 : f32 to vector<32x4xf32>
    %79 = arith.maximumf %77, %78 : vector<32x4xf32>
    %80 = arith.truncf %79 : vector<32x4xf32> to vector<32x4xbf16>
    %c0_68 = arith.constant 0 : index
    %c0_69 = arith.constant 0 : index
    %81 = vector.load %arg5[%c0_68, %c0_69] : memref<32x32xbf16, #tpu.memory_space<vmem>>, vector<32x32xbf16>
    %c0_70 = arith.constant 0 : index
    %c0_71 = arith.constant 0 : index
    %82 = vector.load %arg6[%c0_70, %c0_71] : memref<32x1xf32, #tpu.memory_space<vmem>>, vector<32x1xf32>
    %cst_72 = arith.constant dense<0.000000e+00> : vector<32x4xf32>
    %83 = tpu.matmul %81, %80, %cst_72 {dimension_numbers = #tpu.dot_dimension_numbers<[1], [0], [0], [1], [0, 0, 1, 1], [], []>} : vector<32x32xbf16>, vector<32x4xbf16>, vector<32x4xf32> -> vector<32x4xf32>
    %84 = vector.broadcast %82 : vector<32x1xf32> to vector<32x4xf32>
    %85 = arith.addf %83, %84 : vector<32x4xf32>
    %cst_73 = arith.constant 0.000000e+00 : f32
    %86 = vector.broadcast %cst_73 : f32 to vector<32x4xf32>
    %87 = arith.maximumf %85, %86 : vector<32x4xf32>
    %88 = arith.maximumf %70, %87 : vector<32x4xf32>
    %c0_74 = arith.constant 0 : index
    %c5 = arith.constant 5 : index
    %c0_75 = arith.constant 0 : index
    %c0_76 = arith.constant 0 : index
    %89 = vector.load %arg2[%c0_74, %c5, %c0_75, %c0_76] : memref<1x8x6x4xbf16, #tpu.memory_space<vmem>>, vector<1x1x6x4xbf16>
    %90 = vector.shape_cast %89 : vector<1x1x6x4xbf16> to vector<6x4xbf16>
    %c0_77 = arith.constant 0 : index
    %c0_78 = arith.constant 0 : index
    %91 = vector.load %arg3[%c0_77, %c0_78] : memref<32x6xbf16, #tpu.memory_space<vmem>>, vector<32x6xbf16>
    %c0_79 = arith.constant 0 : index
    %c0_80 = arith.constant 0 : index
    %92 = vector.load %arg4[%c0_79, %c0_80] : memref<32x1xf32, #tpu.memory_space<vmem>>, vector<32x1xf32>
    %cst_81 = arith.constant dense<0.000000e+00> : vector<32x4xf32>
    %93 = tpu.matmul %91, %90, %cst_81 {dimension_numbers = #tpu.dot_dimension_numbers<[1], [0], [0], [1], [0, 0, 1, 1], [], []>} : vector<32x6xbf16>, vector<6x4xbf16>, vector<32x4xf32> -> vector<32x4xf32>
    %94 = vector.broadcast %92 : vector<32x1xf32> to vector<32x4xf32>
    %95 = arith.addf %93, %94 : vector<32x4xf32>
    %cst_82 = arith.constant 0.000000e+00 : f32
    %96 = vector.broadcast %cst_82 : f32 to vector<32x4xf32>
    %97 = arith.maximumf %95, %96 : vector<32x4xf32>
    %98 = arith.truncf %97 : vector<32x4xf32> to vector<32x4xbf16>
    %c0_83 = arith.constant 0 : index
    %c0_84 = arith.constant 0 : index
    %99 = vector.load %arg5[%c0_83, %c0_84] : memref<32x32xbf16, #tpu.memory_space<vmem>>, vector<32x32xbf16>
    %c0_85 = arith.constant 0 : index
    %c0_86 = arith.constant 0 : index
    %100 = vector.load %arg6[%c0_85, %c0_86] : memref<32x1xf32, #tpu.memory_space<vmem>>, vector<32x1xf32>
    %cst_87 = arith.constant dense<0.000000e+00> : vector<32x4xf32>
    %101 = tpu.matmul %99, %98, %cst_87 {dimension_numbers = #tpu.dot_dimension_numbers<[1], [0], [0], [1], [0, 0, 1, 1], [], []>} : vector<32x32xbf16>, vector<32x4xbf16>, vector<32x4xf32> -> vector<32x4xf32>
    %102 = vector.broadcast %100 : vector<32x1xf32> to vector<32x4xf32>
    %103 = arith.addf %101, %102 : vector<32x4xf32>
    %cst_88 = arith.constant 0.000000e+00 : f32
    %104 = vector.broadcast %cst_88 : f32 to vector<32x4xf32>
    %105 = arith.maximumf %103, %104 : vector<32x4xf32>
    %106 = arith.maximumf %88, %105 : vector<32x4xf32>
    %c0_89 = arith.constant 0 : index
    %c6 = arith.constant 6 : index
    %c0_90 = arith.constant 0 : index
    %c0_91 = arith.constant 0 : index
    %107 = vector.load %arg2[%c0_89, %c6, %c0_90, %c0_91] : memref<1x8x6x4xbf16, #tpu.memory_space<vmem>>, vector<1x1x6x4xbf16>
    %108 = vector.shape_cast %107 : vector<1x1x6x4xbf16> to vector<6x4xbf16>
    %c0_92 = arith.constant 0 : index
    %c0_93 = arith.constant 0 : index
    %109 = vector.load %arg3[%c0_92, %c0_93] : memref<32x6xbf16, #tpu.memory_space<vmem>>, vector<32x6xbf16>
    %c0_94 = arith.constant 0 : index
    %c0_95 = arith.constant 0 : index
    %110 = vector.load %arg4[%c0_94, %c0_95] : memref<32x1xf32, #tpu.memory_space<vmem>>, vector<32x1xf32>
    %cst_96 = arith.constant dense<0.000000e+00> : vector<32x4xf32>
    %111 = tpu.matmul %109, %108, %cst_96 {dimension_numbers = #tpu.dot_dimension_numbers<[1], [0], [0], [1], [0, 0, 1, 1], [], []>} : vector<32x6xbf16>, vector<6x4xbf16>, vector<32x4xf32> -> vector<32x4xf32>
    %112 = vector.broadcast %110 : vector<32x1xf32> to vector<32x4xf32>
    %113 = arith.addf %111, %112 : vector<32x4xf32>
    %cst_97 = arith.constant 0.000000e+00 : f32
    %114 = vector.broadcast %cst_97 : f32 to vector<32x4xf32>
    %115 = arith.maximumf %113, %114 : vector<32x4xf32>
    %116 = arith.truncf %115 : vector<32x4xf32> to vector<32x4xbf16>
    %c0_98 = arith.constant 0 : index
    %c0_99 = arith.constant 0 : index
    %117 = vector.load %arg5[%c0_98, %c0_99] : memref<32x32xbf16, #tpu.memory_space<vmem>>, vector<32x32xbf16>
    %c0_100 = arith.constant 0 : index
    %c0_101 = arith.constant 0 : index
    %118 = vector.load %arg6[%c0_100, %c0_101] : memref<32x1xf32, #tpu.memory_space<vmem>>, vector<32x1xf32>
    %cst_102 = arith.constant dense<0.000000e+00> : vector<32x4xf32>
    %119 = tpu.matmul %117, %116, %cst_102 {dimension_numbers = #tpu.dot_dimension_numbers<[1], [0], [0], [1], [0, 0, 1, 1], [], []>} : vector<32x32xbf16>, vector<32x4xbf16>, vector<32x4xf32> -> vector<32x4xf32>
    %120 = vector.broadcast %118 : vector<32x1xf32> to vector<32x4xf32>
    %121 = arith.addf %119, %120 : vector<32x4xf32>
    %cst_103 = arith.constant 0.000000e+00 : f32
    %122 = vector.broadcast %cst_103 : f32 to vector<32x4xf32>
    %123 = arith.maximumf %121, %122 : vector<32x4xf32>
    %124 = arith.maximumf %106, %123 : vector<32x4xf32>
    %c0_104 = arith.constant 0 : index
    %c7 = arith.constant 7 : index
    %c0_105 = arith.constant 0 : index
    %c0_106 = arith.constant 0 : index
    %125 = vector.load %arg2[%c0_104, %c7, %c0_105, %c0_106] : memref<1x8x6x4xbf16, #tpu.memory_space<vmem>>, vector<1x1x6x4xbf16>
    %126 = vector.shape_cast %125 : vector<1x1x6x4xbf16> to vector<6x4xbf16>
    %c0_107 = arith.constant 0 : index
    %c0_108 = arith.constant 0 : index
    %127 = vector.load %arg3[%c0_107, %c0_108] : memref<32x6xbf16, #tpu.memory_space<vmem>>, vector<32x6xbf16>
    %c0_109 = arith.constant 0 : index
    %c0_110 = arith.constant 0 : index
    %128 = vector.load %arg4[%c0_109, %c0_110] : memref<32x1xf32, #tpu.memory_space<vmem>>, vector<32x1xf32>
    %cst_111 = arith.constant dense<0.000000e+00> : vector<32x4xf32>
    %129 = tpu.matmul %127, %126, %cst_111 {dimension_numbers = #tpu.dot_dimension_numbers<[1], [0], [0], [1], [0, 0, 1, 1], [], []>} : vector<32x6xbf16>, vector<6x4xbf16>, vector<32x4xf32> -> vector<32x4xf32>
    %130 = vector.broadcast %128 : vector<32x1xf32> to vector<32x4xf32>
    %131 = arith.addf %129, %130 : vector<32x4xf32>
    %cst_112 = arith.constant 0.000000e+00 : f32
    %132 = vector.broadcast %cst_112 : f32 to vector<32x4xf32>
    %133 = arith.maximumf %131, %132 : vector<32x4xf32>
    %134 = arith.truncf %133 : vector<32x4xf32> to vector<32x4xbf16>
    %c0_113 = arith.constant 0 : index
    %c0_114 = arith.constant 0 : index
    %135 = vector.load %arg5[%c0_113, %c0_114] : memref<32x32xbf16, #tpu.memory_space<vmem>>, vector<32x32xbf16>
    %c0_115 = arith.constant 0 : index
    %c0_116 = arith.constant 0 : index
    %136 = vector.load %arg6[%c0_115, %c0_116] : memref<32x1xf32, #tpu.memory_space<vmem>>, vector<32x1xf32>
    %cst_117 = arith.constant dense<0.000000e+00> : vector<32x4xf32>
    %137 = tpu.matmul %135, %134, %cst_117 {dimension_numbers = #tpu.dot_dimension_numbers<[1], [0], [0], [1], [0, 0, 1, 1], [], []>} : vector<32x32xbf16>, vector<32x4xbf16>, vector<32x4xf32> -> vector<32x4xf32>
    %138 = vector.broadcast %136 : vector<32x1xf32> to vector<32x4xf32>
    %139 = arith.addf %137, %138 : vector<32x4xf32>
    %cst_118 = arith.constant 0.000000e+00 : f32
    %140 = vector.broadcast %cst_118 : f32 to vector<32x4xf32>
    %141 = arith.maximumf %139, %140 : vector<32x4xf32>
    %142 = arith.maximumf %124, %141 : vector<32x4xf32>
    %c0_119 = arith.constant 0 : index
    %c0_120 = arith.constant 0 : index
    %c0_121 = arith.constant 0 : index
    %143 = vector.load %arg7[%c0_119, %c0_120, %c0_121] : memref<1x32x4xf32, #tpu.memory_space<vmem>>, vector<1x32x4xf32>
    %144 = vector.shape_cast %143 : vector<1x32x4xf32> to vector<32x4xf32>
    %145 = vector.shape_cast %142 : vector<32x4xf32> to vector<1x32x4xf32>
    tpu.vector_store %arg7[%c0_119, %c0_120, %c0_121], %145 {strides = array<i32>} : memref<1x32x4xf32, #tpu.memory_space<vmem>>, vector<1x32x4xf32>,
    return
  }
  func.func @transform_0(%arg0: i32, %arg1: i32) -> (i32, i32, i32, i32) {
    %c0_i32 = arith.constant 0 : i32
    %c0_i32_0 = arith.constant 0 : i32
    %c0_i32_1 = arith.constant 0 : i32
    return %arg0, %c0_i32, %c0_i32_0, %arg1 : i32, i32, i32, i32
  }
  func.func @transform_1(%arg0: i32, %arg1: i32) -> (i32, i32) {
    %c0_i32 = arith.constant 0 : i32
    %c0_i32_0 = arith.constant 0 : i32
    %c0_i32_1 = arith.constant 0 : i32
    return %c0_i32, %c0_i32_0 : i32, i32
  }
  func.func @transform_2(%arg0: i32, %arg1: i32) -> (i32, i32) {
    %c0_i32 = arith.constant 0 : i32
    %c0_i32_0 = arith.constant 0 : i32
    %c0_i32_1 = arith.constant 0 : i32
    return %c0_i32, %c0_i32_0 : i32, i32
  }
  func.func @transform_3(%arg0: i32, %arg1: i32) -> (i32, i32) {
    %c0_i32 = arith.constant 0 : i32
    %c0_i32_0 = arith.constant 0 : i32
    %c0_i32_1 = arith.constant 0 : i32
    return %c0_i32, %c0_i32_0 : i32, i32
  }
  func.func @transform_4(%arg0: i32, %arg1: i32) -> (i32, i32) {
    %c0_i32 = arith.constant 0 : i32
    %c0_i32_0 = arith.constant 0 : i32
    %c0_i32_1 = arith.constant 0 : i32
    return %c0_i32, %c0_i32_0 : i32, i32
  }
  func.func @transform_5(%arg0: i32, %arg1: i32) -> (i32, i32, i32) {
    %c0_i32 = arith.constant 0 : i32
    %c0_i32_0 = arith.constant 0 : i32
    return %arg0, %c0_i32, %arg1 : i32, i32, i32
  }
}

</mosaic_0001>

<bundles_post_ra>
// kernel: custom-call.8
= control target key start
LH: loop header
LB: loop body
LE: loop exit
PB: predicated region body
PF: predicated region fallthrough
CT: control target
= control target key end

     0   :  { %s6_s0 = inlined_call_operand.vmem [shape: f32[2,16], index: 0, kind: output, shape index: {}]  }

// kernel: transition_down_forward.1
= control target key start
LH: loop header
LB: loop body
LE: loop exit
PB: predicated region body
PF: predicated region fallthrough
CT: control target
= control target key end

     0   :  { %s1042_s18 = smov 0   ;;  %s1044_s19 = smov 0   ;;  %s1303_s0 = inlined_call_operand.vmem [shape: bf16[2,8,6,4], index: 0, kind: input, shape index: {}]   ;;  %s1304_s1 = inlined_call_operand.vmem [shape: bf16[32,6], index: 1, kind: input, shape index: {}]   ;;  %s1305_s2 = inlined_call_operand.vmem [shape: f32[32,1], index: 2, kind: input, shape index: {}]   ;;  %s1306_s3 = inlined_call_operand.vmem [shape: bf16[32,32], index: 3, kind: input, shape index: {}]   ;;  %s1307_s4 = inlined_call_operand.vmem [shape: f32[32,1], index: 4, kind: input, shape index: {}]   ;;  %s1308_s5 = inlined_call_operand.vmem [shape: f32[2,32,4], index: 5, kind: output, shape index: {}]  }
   0x1   :  { %s1046_s20 = smov 0  }
   0x2 LB: > { %s27_s21 = sadd.s32 1, %s1005_s19  ;;  %p891_p0 = scmp.ge.s32.totalorder %s1009_s20, 1  ;;  %s1009_s20 = sphi %s1046_s20, %s15_s20   ;;  %s1005_s19 = sphi %s1044_s19, %s1310_s19   ;;  %s1001_s18 = sphi %s1042_s18, %s1309_s18  }
   0x3   : > { %p29_p1 = scmp.ge.s32.totalorder %s27_s21, 2  ;;  %p206_p2 = scmp.lt.s32.totalorder %s1009_s20, 3 }
   0x5   : > { %s1312_s21 = smov (%p29_p1, %s27_s21), 0  ;;  %p207_p3 = pnand %p891_p0, %p206_p2 }
   0x6   : > { %p240_p4 = scmp.lt.s32.totalorder (!%p207_p3), %s1001_s18, 1 }
   0x7   : > { %210 = sbr.rel (%p207_p3) target bundleno = 605 (0x25d), region = 40 }
   0xc   : > { %v264_v0 = vld [vmem:[%s1305_s2 + $0x10] sm:$0xff]  ;;  %v1011_v1 = vmov 0   ;;  %v262_v2 = vld [vmem:[%s1305_s2] sm:$0xff]  ;;  %s1314_s18 = smov (!%p240_p4, %s1001_s18), 1  ;;  %vm303_vm0 = vcmask 1042432   ;;  %v265_v9 = vld [vmem:[%s1305_s2 + $0x18] sm:$0xff] }
   0xd   : > { %985 = vset.pattern.permute.xlu1 %v1011_v1  ;;  %984 = vset.pattern.permute.xlu0 %v1011_v1  ;;  %s953_s26 = sshll.u32 %s1314_s18, 5  ;;  %v1084_v8 = vld [vmem:[%s1304_s1] sm:$0xff]  ;;  %v263_v10 = vld [vmem:[%s1305_s2 + $0x8] sm:$0xff]  ;;  %vm296_vm1 = vcmask 48128   ;;  %v338_v12 = vld [vmem:[%s1307_s4 + $0x10] sm:$0xff]  ;;  %vm370_vm2 = vcmask 261120  }
   0xe   : > { %278 = vperm.xlu0 %984, %v264_v0   ;;  %268 = vperm.xlu1 %985, %v262_v2   ;;  %s1074_s29 = scalar_lea.vmem %s1303_s0, %s953_s26  ;;  %v339_v13 = vld [vmem:[%s1307_s4 + $0x18] sm:$0xff]  ;;  %v1106_v14 = vld [vmem:[%s1304_s1 + $0x8] sm:$0xff]  ;;  %v1149_v50 = vld [vmem:[%s1306_s3] sm:$0xff]  ;;  %s1276_s7 = scalar_lea.vmem %s1308_s5, %s953_s26  ;;  %vm799_vm3 = vcmask 31744  }
   0xf   : > { %986 = vset.pattern.permute.xlu2 %v1011_v1  ;;  %v257_v3 = vld [vmem:[%s1074_s29] sm:$0x7]  ;;  %v916_v4 = vld [vmem:[%s1074_s29 + $0x4] sm:$0x7]  ;;  %v921_v5 = vld [vmem:[%s1074_s29 + $0x8] sm:$0x7] }
  0x10   : > { %v305_v6 = vsel %vm303_vm0, %v257_v3, 0  ;;  %v403_v7 = vsel %vm303_vm0, %v916_v4, 0  ;;  %v460_v11 = vsel %vm303_vm0, %v921_v5, 0  ;;  %v931_v15 = vld [vmem:[%s1074_s29 + $0x10] sm:$0x7]  ;;  %v336_v56 = vld [vmem:[%s1307_s4] sm:$0xff] }
  0x11   : > { %314 = vmatpush.bf16.msra.mxu0 %v305_v6  ;;  %412 = vmatpush.bf16.msra.mxu2 %v403_v7  ;;  %v574_v16 = vsel %vm303_vm0, %v931_v15, 0  ;;  %v941_v17 = vld [vmem:[%s1074_s29 + $0x18] sm:$0x7]  ;;  %v926_v44 = vld [vmem:[%s1074_s29 + $0xc] sm:$0x7] }
  0x12   : > { %v688_v18 = vsel %vm303_vm0, %v941_v17, 0  ;;  %v517_v49 = vsel %vm303_vm0, %v926_v44, 0  ;;  %342 = vperm.xlu2 %986, %v336_v56   ;;  %v337_v58 = vld [vmem:[%s1307_s4 + $0x8] sm:$0xff]  ;;  %v936_v6 = vld [vmem:[%s1074_s29 + $0x14] sm:$0x7] }
  0x13   : > { %v1164_v59 = vld [vmem:[%s1306_s3 + $0x8] sm:$0xff] }
  0x14   : > { %904 = vmatmul.msk.bf16.vlgmr.msra.gmra.mxu0 %vm296_vm1, %v1084_v8  ;;  %917 = vmatmul.msk.bf16.vlgmr.msra.gmra.mxu2 %vm296_vm1, %v1084_v8 }
  0x15   : > { %469 = vmatpush.bf16.msrb.mxu0 %v460_v11 }
  0x16   : > { %283 = vperm.xlu0 %984, %v265_v9   ;;  %273 = vperm.xlu1 %985, %v263_v10   ;;  %v631_v9 = vsel %vm303_vm0, %v936_v6, 0 }
  0x19   : > { %583 = vmatpush.bf16.msra.mxu0 %v574_v16 }
  0x1a   : > { %347 = vperm.xlu2 %986, %v337_v58  }
  0x1e   : > { %352 = vperm.xlu0 %984, %v338_v12   ;;  %357 = vperm.xlu1 %985, %v339_v13  }
  0x24   : > { %905 = vmatmul.msk.bf16.gmra.mxu0 %vm296_vm1, %v1106_v14  ;;  %918 = vmatmul.msk.bf16.gmra.mxu2 %vm296_vm1, %v1106_v14 }
  0x34   : > { %922 = vmatmul.msk.bf16.vlgmr.msrb.gmra.mxu0 %vm296_vm1, %v1084_v8 }
  0x35   : > { %697 = vmatpush.bf16.msrb.mxu0 %v688_v18 }
  0x44   : > { %923 = vmatmul.msk.bf16.gmra.mxu0 %vm296_vm1, %v1106_v14 }
  0x54   : > { %932 = vmatmul.msk.bf16.vlgmr.msra.gmra.mxu0 %vm296_vm1, %v1084_v8 }
  0x64   : > { %933 = vmatmul.msk.bf16.gmra.mxu0 %vm296_vm1, %v1106_v14 }
  0x74   : > { %942 = vmatmul.msk.bf16.vlgmr.msrb.gmra.mxu0 %vm296_vm1, %v1084_v8 }
  0x80   : > { %v1128_v22 = vpop.permute.xlu1 %268  ;;  %v1130_v23 = vpop.permute.xlu0 %278 }
  0x84   : > { %943 = vmatmul.msk.bf16.gmra.mxu0 %vm296_vm1, %v1106_v14 }
  0x88   : > { %v1132_v26 = vpop.permute.xlu1 %273  ;;  %v1135_v29 = vpop.permute.xlu0 %283 }
  0x91   : > { %v316_v19 = vpop.f32.mrf.mxu0 }
  0x92   : > { %v317_v33 = vadd.f32 %v316_v19, %v1128_v22 }
  0x94   : > { %v326_v40 = vmax.f32 %v317_v33, 0.0 }
  0x97   : > { %v414_v20 = vpop.f32.mrf.mxu2 }
  0x98   : > { %v415_v41 = vadd.f32 %v414_v20, %v1128_v22 }
  0x99   : > { %v318_v21 = vpop.f32.mrf.mxu0 }
  0x9a   : > { %v319_v31 = vadd.f32 %v318_v21, %v1132_v26  ;;  %v424_v51 = vmax.f32 %v415_v41, 0.0 }
  0x9c   : > { %v327_v36 = vmax.f32 %v319_v31, 0.0 }
  0x9e   : > { %v330_v48 = vpack.c.bf16 %v327_v36, %v326_v40 }
  0x9f   : > { %v416_v24 = vpop.f32.mrf.mxu2 }
  0xa0   : > { %v417_v42 = vadd.f32 %v416_v24, %v1132_v26 }
  0xa1   : > { %v321_v25 = vpop.f32.mrf.mxu0 }
  0xa2   : > { %v322_v28 = vadd.f32 %v321_v25, %v1130_v23  ;;  %v425_v52 = vmax.f32 %v417_v42, 0.0 }
  0xa4   : > { %v328_v34 = vmax.f32 %v322_v28, 0.0  ;;  %v428_v54 = vpack.c.bf16 %v425_v52, %v424_v51 }
  0xa7   : > { %v419_v27 = vpop.f32.mrf.mxu2 }
  0xa8   : > { %v420_v37 = vadd.f32 %v419_v27, %v1130_v23  ;;  %v946_v27 = vld [vmem:[%s1074_s29 + $0x1c] sm:$0x7] }
  0xa9   : > { %v323_v30 = vpop.f32.mrf.mxu0 }
  0xaa   : > { %v324_v32 = vadd.f32 %v323_v30, %v1135_v29  ;;  %v426_v46 = vmax.f32 %v420_v37, 0.0  ;;  %v745_v30 = vsel %vm303_vm0, %v946_v27, 0 }
  0xac   : > { %v329_v35 = vmax.f32 %v324_v32, 0.0 }
  0xae   : > { %v331_v38 = vpack.c.bf16 %v329_v35, %v328_v34 }
  0xaf   : > { %v421_v39 = vpop.f32.mrf.mxu2 }
  0xb0   : > { %v422_v43 = vadd.f32 %v421_v39, %v1135_v29  ;;  %383 = vmatpush.bf16.msra.mxu1 %v331_v38 }
  0xb1   : > { %v471_v45 = vpop.f32.mrf.mxu0 }
  0xb2   : > { %v427_v47 = vmax.f32 %v422_v43, 0.0  ;;  %v472_v0 = vadd.f32 %v471_v45, %v1128_v22 }
  0xb4   : > { %384 = vmatpush.bf16.msra.mxu1 %v330_v48  ;;  %v429_v53 = vpack.c.bf16 %v427_v47, %v426_v46  ;;  %v481_v5 = vmax.f32 %v472_v0, 0.0  ;;  %v1210_v46 = vpop.permute.xlu2 %342 }
  0xb6   : > { %436 = vmatpush.bf16.msra.mxu3 %v429_v53 }
  0xb7   : > { %914 = vmatmul.msk.bf16.vlgmr.msra.gmra.mxu1 %vm370_vm2, %v1149_v50 }
  0xb8   : > { %526 = vmatpush.bf16.msrb.mxu1 %v517_v49 }
  0xb9   : > { %v473_v55 = vpop.f32.mrf.mxu0 }
  0xba   : > { %437 = vmatpush.bf16.msra.mxu3 %v428_v54  ;;  %v474_v62 = vadd.f32 %v473_v55, %v1132_v26 }
  0xbc   : > { %v482_v3 = vmax.f32 %v474_v62, 0.0  ;;  %640 = vmatpush.bf16.msra.mxu1 %v631_v9  ;;  %v1214_v54 = vpop.permute.xlu2 %347 }
  0xbd   : > { %919 = vmatmul.msk.bf16.vlgmr.msra.gmra.mxu3 %vm370_vm2, %v1149_v50 }
  0xbe   : > { %v485_v10 = vpack.c.bf16 %v482_v3, %v481_v5 }
  0xc1   : > { %v476_v57 = vpop.f32.mrf.mxu0 }
  0xc2   : > { %v477_v60 = vadd.f32 %v476_v57, %v1130_v23 }
  0xc4   : > { %v483_v1 = vmax.f32 %v477_v60, 0.0 }
  0xc7   : > { %915 = vmatmul.msk.bf16.gmra.mxu1 %vm370_vm2, %v1164_v59 }
  0xc9   : > { %v478_v61 = vpop.f32.mrf.mxu0 }
  0xca   : > { %v479_v63 = vadd.f32 %v478_v61, %v1135_v29 }
  0xcc   : > { %v484_v2 = vmax.f32 %v479_v63, 0.0  ;;  %v1224_v63 = vpop.permute.xlu0 %352 }
  0xcd   : > { %920 = vmatmul.msk.bf16.gmra.mxu3 %vm370_vm2, %v1164_v59 }
  0xce   : > { %v486_v4 = vpack.c.bf16 %v484_v2, %v483_v1 }
  0xd0   : > { %493 = vmatpush.bf16.msrb.mxu2 %v486_v4 }
  0xd1   : > { %v585_v7 = vpop.f32.mrf.mxu0 }
  0xd2   : > { %v586_v18 = vadd.f32 %v585_v7, %v1128_v22 }
  0xd4   : > { %494 = vmatpush.bf16.msrb.mxu2 %v485_v10  ;;  %v595_v25 = vmax.f32 %v586_v18, 0.0 }
  0xd7   : > { %924 = vmatmul.msk.bf16.vlgmr.msrb.gmra.mxu2 %vm370_vm2, %v1149_v50  ;;  %927 = vmatmul.msk.bf16.vlgmr.msrb.gmra.mxu1 %vm296_vm1, %v1084_v8 }
  0xd8   : > { %754 = vmatpush.bf16.msrb.mxu1 %v745_v30 }
  0xd9   : > { %v587_v11 = vpop.f32.mrf.mxu0 }
  0xda   : > { %v588_v16 = vadd.f32 %v587_v11, %v1132_v26 }
  0xdc   : > { %v596_v21 = vmax.f32 %v588_v16, 0.0 }
  0xde   : > { %v599_v31 = vpack.c.bf16 %v596_v21, %v595_v25 }
  0xe1   : > { %v590_v12 = vpop.f32.mrf.mxu0 }
  0xe2   : > { %v591_v13 = vadd.f32 %v590_v12, %v1130_v23 }
  0xe4   : > { %v597_v19 = vmax.f32 %v591_v13, 0.0 }
  0xe7   : > { %925 = vmatmul.msk.bf16.gmra.mxu2 %vm370_vm2, %v1164_v59  ;;  %928 = vmatmul.msk.bf16.gmra.mxu1 %vm296_vm1, %v1106_v14 }
  0xe9   : > { %v592_v15 = vpop.f32.mrf.mxu0 }
  0xea   : > { %v593_v17 = vadd.f32 %v592_v15, %v1135_v29 }
  0xec   : > { %v598_v20 = vmax.f32 %v593_v17, 0.0 }
  0xee   : > { %v600_v24 = vpack.c.bf16 %v598_v20, %v597_v19 }
  0xf0   : > { %607 = vmatpush.bf16.msra.mxu2 %v600_v24 }
  0xf1   : > { %v699_v28 = vpop.f32.mrf.mxu0 }
  0xf2   : > { %v700_v38 = vadd.f32 %v699_v28, %v1128_v22 }
  0xf4   : > { %608 = vmatpush.bf16.msra.mxu2 %v599_v31  ;;  %v709_v43 = vmax.f32 %v700_v38, 0.0 }
  0xf7   : > { %934 = vmatmul.msk.bf16.vlgmr.msra.gmra.mxu2 %vm370_vm2, %v1149_v50  ;;  %937 = vmatmul.msk.bf16.vlgmr.msra.gmra.mxu1 %vm296_vm1, %v1084_v8 }
  0xf9   : > { %v701_v32 = vpop.f32.mrf.mxu0 }
  0xfa   : > { %v702_v36 = vadd.f32 %v701_v32, %v1132_v26 }
  0xfc   : > { %v710_v41 = vmax.f32 %v702_v36, 0.0 }
  0xfe   : > { %v713_v44 = vpack.c.bf16 %v710_v41, %v709_v43 }
 0x101   : > { %v704_v33 = vpop.f32.mrf.mxu0 }
 0x102   : > { %v705_v34 = vadd.f32 %v704_v33, %v1130_v23 }
 0x104   : > { %v711_v39 = vmax.f32 %v705_v34, 0.0 }
 0x107   : > { %935 = vmatmul.msk.bf16.gmra.mxu2 %vm370_vm2, %v1164_v59  ;;  %938 = vmatmul.msk.bf16.gmra.mxu1 %vm296_vm1, %v1106_v14 }
 0x109   : > { %v706_v35 = vpop.f32.mrf.mxu0 }
 0x10a   : > { %v707_v37 = vadd.f32 %v706_v35, %v1135_v29 }
 0x10c   : > { %v712_v40 = vmax.f32 %v707_v37, 0.0 }
 0x10e   : > { %v714_v42 = vpack.c.bf16 %v712_v40, %v711_v39 }
 0x110   : > { %721 = vmatpush.bf16.msrb.mxu2 %v714_v42 }
 0x114   : > { %722 = vmatpush.bf16.msrb.mxu2 %v713_v44 }
 0x117   : > { %944 = vmatmul.msk.bf16.vlgmr.msrb.gmra.mxu2 %vm370_vm2, %v1149_v50  ;;  %947 = vmatmul.msk.bf16.vlgmr.msrb.gmra.mxu1 %vm296_vm1, %v1084_v8 }
 0x127   : > { %945 = vmatmul.msk.bf16.gmra.mxu2 %vm370_vm2, %v1164_v59  ;;  %948 = vmatmul.msk.bf16.gmra.mxu1 %vm296_vm1, %v1106_v14 }
 0x134   : > { %v386_v45 = vpop.f32.mrf.mxu1 }
 0x135   : > { %v387_v48 = vadd.f32 %v386_v45, %v1210_v46 }
 0x137   : > { %v396_v52 = vmax.f32 %v387_v48, 0.0 }
 0x13c   : > { %v388_v47 = vpop.f32.mrf.mxu1 }
 0x13d   : > { %v389_v56 = vadd.f32 %v388_v47, %v1214_v54 }
 0x13f   : > { %v397_v58 = vmax.f32 %v389_v56, 0.0 }
 0x140   : > { %v439_v49 = vpop.f32.mrf.mxu3 }
 0x141   : > { %v440_v51 = vadd.f32 %v439_v49, %v1210_v46 }
 0x143   : > { %v449_v53 = vmax.f32 %v440_v51, 0.0 }
 0x144   : > { %v391_v8 = vpop.f32.mrf.mxu1 }
 0x145   : > { %v1216_v55 = vmax.f32 %v396_v52, %v449_v53  ;;  %v392_v0 = vadd.f32 %v391_v8, %v1224_v63 }
 0x147   : > { %v398_v3 = vmax.f32 %v392_v0, 0.0 }
 0x148   : > { %v441_v57 = vpop.f32.mrf.mxu3 }
 0x149   : > { %v442_v14 = vadd.f32 %v441_v57, %v1214_v54 }
 0x14b   : > { %v450_v60 = vmax.f32 %v442_v14, 0.0 }
 0x14c   : > { %v1220_v61 = vpop.f32.mrf.mxu1 }
 0x14d   : > { %v1222_v62 = vmax.f32 %v397_v58, %v450_v60 }
 0x150   : > { %v444_v1 = vpop.f32.mrf.mxu3 }
 0x151   : > { %v445_v2 = vadd.f32 %v444_v1, %v1224_v63 }
 0x153   : > { %v451_v4 = vmax.f32 %v445_v2, 0.0 }
 0x154   : > { %v528_v5 = vpop.f32.mrf.mxu1 }
 0x155   : > { %v1228_v6 = vmax.f32 %v398_v3, %v451_v4  ;;  %v529_v15 = vadd.f32 %v528_v5, %v1128_v22 }
 0x157   : > { %v538_v20 = vmax.f32 %v529_v15, 0.0 }
 0x158   : > { %v446_v57 = vpop.f32.mrf.mxu3 }
 0x15c   : > { %v530_v7 = vpop.f32.mrf.mxu1 }
 0x15d   : > { %v531_v12 = vadd.f32 %v530_v7, %v1132_v26 }
 0x15f   : > { %v539_v18 = vmax.f32 %v531_v12, 0.0 }
 0x161   : > { %v542_v24 = vpack.c.bf16 %v539_v18, %v538_v20 }
 0x164   : > { %v533_v9 = vpop.f32.mrf.mxu1 }
 0x165   : > { %v534_v10 = vadd.f32 %v533_v9, %v1130_v23 }
 0x167   : > { %v540_v16 = vmax.f32 %v534_v10, 0.0 }
 0x16c   : > { %v535_v11 = vpop.f32.mrf.mxu1 }
 0x16d   : > { %v536_v13 = vadd.f32 %v535_v11, %v1135_v29 }
 0x16f   : > { %v541_v17 = vmax.f32 %v536_v13, 0.0 }
 0x171   : > { %v543_v19 = vpack.c.bf16 %v541_v17, %v540_v16 }
 0x173   : > { %550 = vmatpush.bf16.msrb.mxu3 %v543_v19 }
 0x174   : > { %v642_v21 = vpop.f32.mrf.mxu1 }
 0x175   : > { %v643_v33 = vadd.f32 %v642_v21, %v1128_v22 }
 0x177   : > { %551 = vmatpush.bf16.msrb.mxu3 %v542_v24  ;;  %v652_v38 = vmax.f32 %v643_v33, 0.0 }
 0x17a   : > { %929 = vmatmul.msk.bf16.vlgmr.msrb.gmra.mxu3 %vm370_vm2, %v1149_v50 }
 0x17c   : > { %v644_v25 = vpop.f32.mrf.mxu1 }
 0x17d   : > { %v645_v31 = vadd.f32 %v644_v25, %v1132_v26 }
 0x17f   : > { %v653_v36 = vmax.f32 %v645_v31, 0.0 }
 0x181   : > { %v656_v40 = vpack.c.bf16 %v653_v36, %v652_v38 }
 0x184   : > { %v647_v27 = vpop.f32.mrf.mxu1 }
 0x185   : > { %v648_v28 = vadd.f32 %v647_v27, %v1130_v23 }
 0x187   : > { %v654_v34 = vmax.f32 %v648_v28, 0.0 }
 0x18a   : > { %930 = vmatmul.msk.bf16.gmra.mxu3 %vm370_vm2, %v1164_v59 }
 0x18c   : > { %v649_v30 = vpop.f32.mrf.mxu1 }
 0x18d   : > { %v650_v32 = vadd.f32 %v649_v30, %v1135_v29 }
 0x18f   : > { %v655_v35 = vmax.f32 %v650_v32, 0.0 }
 0x191   : > { %v657_v37 = vpack.c.bf16 %v655_v35, %v654_v34 }
 0x193   : > { %664 = vmatpush.bf16.msra.mxu3 %v657_v37 }
 0x194   : > { %v756_v39 = vpop.f32.mrf.mxu1 }
 0x195   : > { %v757_v48 = vadd.f32 %v756_v39, %v1128_v22 }
 0x197   : > { %665 = vmatpush.bf16.msra.mxu3 %v656_v40  ;;  %v766_v8 = vmax.f32 %v757_v48, 0.0 }
 0x19a   : > { %939 = vmatmul.msk.bf16.vlgmr.msra.gmra.mxu3 %vm370_vm2, %v1149_v50 }
 0x19c   : > { %v758_v41 = vpop.f32.mrf.mxu1 }
 0x19d   : > { %v759_v45 = vadd.f32 %v758_v41, %v1132_v26 }
 0x19f   : > { %v767_v52 = vmax.f32 %v759_v45, 0.0 }
 0x1a1   : > { %v770_v56 = vpack.c.bf16 %v767_v52, %v766_v8 }
 0x1a4   : > { %v761_v42 = vpop.f32.mrf.mxu1 }
 0x1a5   : > { %v762_v43 = vadd.f32 %v761_v42, %v1130_v23  ;;  %v496_v23 = vpop.f32.mrf.mxu2 }
 0x1a7   : > { %v768_v49 = vmax.f32 %v762_v43, 0.0  ;;  %v358_v43 = vpop.permute.xlu1 %357 }
 0x1aa   : > { %940 = vmatmul.msk.bf16.gmra.mxu3 %vm370_vm2, %v1164_v59 }
 0x1ac   : > { %v763_v44 = vpop.f32.mrf.mxu1 }
 0x1ad   : > { %v764_v47 = vadd.f32 %v763_v44, %v1135_v29  ;;  %v498_v26 = vpop.f32.mrf.mxu2 }
 0x1ae   : > { %v499_v16 = vadd.f32 %v498_v26, %v1214_v54 }
 0x1af   : > { %v769_v51 = vmax.f32 %v764_v47, 0.0 }
 0x1b0   : > { %v507_v24 = vmax.f32 %v499_v16, 0.0 }
 0x1b1   : > { %v771_v53 = vpack.c.bf16 %v769_v51, %v768_v49 }
 0x1b2   : > { %v511_v33 = vmax.f32 %v1222_v62, %v507_v24  ;;  %v447_v62 = vadd.f32 %v446_v57, %v358_v43 }
 0x1b3   : > { %778 = vmatpush.bf16.msrb.mxu3 %v771_v53 }
 0x1b5   : > { %v501_v29 = vpop.f32.mrf.mxu2 }
 0x1b6   : > { %v502_v32 = vadd.f32 %v501_v29, %v1224_v63  ;;  %v452_v29 = vmax.f32 %v447_v62, 0.0 }
 0x1b7   : > { %779 = vmatpush.bf16.msrb.mxu3 %v770_v56 }
 0x1b8   : > { %v508_v42 = vmax.f32 %v502_v32, 0.0 }
 0x1ba   : > { %949 = vmatmul.msk.bf16.vlgmr.msrb.gmra.mxu3 %vm370_vm2, %v1149_v50  ;;  %v497_v50 = vadd.f32 %v496_v23, %v1210_v46  ;;  %v512_v53 = vmax.f32 %v1228_v6, %v508_v42 }
 0x1bc   : > { %v506_v10 = vmax.f32 %v497_v50, 0.0 }
 0x1bd   : > { %v503_v22 = vpop.f32.mrf.mxu2 }
 0x1be   : > { %v510_v15 = vmax.f32 %v1216_v55, %v506_v10  ;;  %v504_v8 = vadd.f32 %v503_v22, %v358_v43 }
 0x1c5   : > { %v610_v60 = vpop.f32.mrf.mxu2 }
 0x1c6   : > { %v611_v12 = vadd.f32 %v610_v60, %v1210_v46 }
 0x1c8   : > { %v620_v19 = vmax.f32 %v611_v12, 0.0 }
 0x1ca   : > { %950 = vmatmul.msk.bf16.gmra.mxu3 %vm370_vm2, %v1164_v59 }
 0x1cd   : > { %v612_v1 = vpop.f32.mrf.mxu2 }
 0x1ce   : > { %v613_v28 = vadd.f32 %v612_v1, %v1214_v54 }
 0x1d0   : > { %v621_v38 = vmax.f32 %v613_v28, 0.0 }
 0x1d5   : > { %v615_v3 = vpop.f32.mrf.mxu2 }
 0x1d6   : > { %v616_v56 = vadd.f32 %v615_v3, %v1224_v63 }
 0x1d8   : > { %v622_v6 = vmax.f32 %v616_v56, 0.0 }
 0x1dd   : > { %v1254_v7 = vpop.f32.mrf.mxu2 }
 0x1e5   : > { %v724_v11 = vpop.f32.mrf.mxu2 }
 0x1e6   : > { %v725_v25 = vadd.f32 %v724_v11, %v1210_v46 }
 0x1e8   : > { %v734_v34 = vmax.f32 %v725_v25, 0.0 }
 0x1ed   : > { %v726_v55 = vpop.f32.mrf.mxu2 }
 0x1ee   : > { %v727_v44 = vadd.f32 %v726_v55, %v1214_v54 }
 0x1f0   : > { %v735_v23 = vmax.f32 %v727_v44, 0.0 }
 0x1fd   : > { %v553_v14 = vpop.f32.mrf.mxu3 }
 0x1fe   : > { %v554_v59 = vadd.f32 %v553_v14, %v1210_v46  ;;  %v729_v14 = vpop.f32.mrf.mxu2 }
 0x200   : > { %v563_v13 = vmax.f32 %v554_v59, 0.0  ;;  %v730_v59 = vadd.f32 %v729_v14, %v1224_v63 }
 0x202   : > { %v567_v20 = vmax.f32 %v510_v15, %v563_v13  ;;  %v618_v13 = vadd.f32 %v1254_v7, %v358_v43  ;;  %v736_v16 = vmax.f32 %v730_v59, 0.0 }
 0x204   : > { %v624_v31 = vmax.f32 %v567_v20, %v620_v19 }
 0x205   : > { %v555_v58 = vpop.f32.mrf.mxu3 }
 0x206   : > { %v556_v21 = vadd.f32 %v555_v58, %v1214_v54  ;;  %v731_v20 = vpop.f32.mrf.mxu2 }
 0x207   : > { %v732_v28 = vadd.f32 %v731_v20, %v358_v43 }
 0x208   : > { %v564_v30 = vmax.f32 %v556_v21, 0.0  ;;  %v623_v21 = vmax.f32 %v618_v13, 0.0 }
 0x209   : > { %v737_v32 = vmax.f32 %v732_v28, 0.0 }
 0x20a   : > { %v568_v39 = vmax.f32 %v511_v33, %v564_v30 }
 0x20c   : > { %v625_v51 = vmax.f32 %v568_v39, %v621_v38 }
 0x20d   : > { %v558_v0 = vpop.f32.mrf.mxu3 }
 0x20e   : > { %v559_v40 = vadd.f32 %v558_v0, %v1224_v63 }
 0x210   : > { %v565_v49 = vmax.f32 %v559_v40, 0.0 }
 0x212   : > { %v569_v60 = vmax.f32 %v512_v53, %v565_v49 }
 0x214   : > { %v626_v10 = vmax.f32 %v569_v60, %v622_v6 }
 0x215   : > { %v560_v2 = vpop.f32.mrf.mxu3 }
 0x216   : > { %v561_v0 = vadd.f32 %v560_v2, %v358_v43 }
 0x21d   : > { %v667_v4 = vpop.f32.mrf.mxu3 }
 0x21e   : > { %v668_v17 = vadd.f32 %v667_v4, %v1210_v46  ;;  %v509_v4 = vmax.f32 %v504_v8, 0.0 }
 0x220   : > { %v677_v27 = vmax.f32 %v668_v17, 0.0 }
 0x222   : > { %v681_v35 = vmax.f32 %v624_v31, %v677_v27 }
 0x224   : > { %v738_v47 = vmax.f32 %v681_v35, %v734_v34 }
 0x225   : > { %v669_v5 = vpop.f32.mrf.mxu3 }
 0x226   : > { %v670_v36 = vadd.f32 %v669_v5, %v1214_v54 }
 0x228   : > { %v678_v45 = vmax.f32 %v670_v36, 0.0 }
 0x22a   : > { %v682_v26 = vmax.f32 %v625_v51, %v678_v45 }
 0x22c   : > { %v739_v5 = vmax.f32 %v682_v26, %v735_v23 }
 0x22d   : > { %v672_v9 = vpop.f32.mrf.mxu3 }
 0x22e   : > { %v673_v57 = vadd.f32 %v672_v9, %v1224_v63  ;;  %v566_v9 = vmax.f32 %v561_v0, 0.0 }
 0x230   : > { %v679_v22 = vmax.f32 %v673_v57, 0.0 }
 0x232   : > { %v683_v15 = vmax.f32 %v626_v10, %v679_v22 }
 0x234   : > { %v740_v25 = vmax.f32 %v683_v15, %v736_v16 }
 0x235   : > { %v674_v18 = vpop.f32.mrf.mxu3 }
 0x236   : > { %v675_v2 = vadd.f32 %v674_v18, %v358_v43 }
 0x238   : > { %v680_v24 = vmax.f32 %v675_v2, 0.0 }
 0x23d   : > { %v781_v37 = vpop.f32.mrf.mxu3 }
 0x23e   : > { %v782_v41 = vadd.f32 %v781_v37, %v1210_v46  ;;  %v394_v46 = vadd.f32 %v1220_v61, %v358_v43 }
 0x240   : > { %v791_v48 = vmax.f32 %v782_v41, 0.0  ;;  %v399_v61 = vmax.f32 %v394_v46, 0.0 }
 0x242   : > { %v795_v52 = vmax.f32 %v738_v47, %v791_v48  ;;  %v456_v50 = vmax.f32 %v399_v61, %v452_v29 }
 0x244   : > { %800 = vst.msk [vmem:[%s1276_s7] sm:$0xff] %vm799_vm3, %v795_v52  ;;  %v513_v12 = vmax.f32 %v456_v50, %v509_v4 }
 0x245   : > { %v783_v58 = vpop.f32.mrf.mxu3 }
 0x246   : > { %v784_v1 = vadd.f32 %v783_v58, %v1214_v54  ;;  %v570_v17 = vmax.f32 %v513_v12, %v566_v9 }
 0x248   : > { %v792_v3 = vmax.f32 %v784_v1, 0.0  ;;  %v627_v30 = vmax.f32 %v570_v17, %v623_v21 }
 0x24a   : > { %v796_v11 = vmax.f32 %v739_v5, %v792_v3  ;;  %v684_v7 = vmax.f32 %v627_v30, %v680_v24 }
 0x24c   : > { %801 = vst.msk [vmem:[%s1276_s7 + $0x8] sm:$0xff] %vm799_vm3, %v796_v11  ;;  %v741_v33 = vmax.f32 %v684_v7, %v737_v32 }
 0x24d   : > { %v786_v54 = vpop.f32.mrf.mxu3 }
 0x24e   : > { %v787_v19 = vadd.f32 %v786_v54, %v1224_v63 }
 0x250   : > { %v793_v27 = vmax.f32 %v787_v19, 0.0 }
 0x252   : > { %v797_v31 = vmax.f32 %v740_v25, %v793_v27 }
 0x254   : > { %802 = vst.msk [vmem:[%s1276_s7 + $0x10] sm:$0xff] %vm799_vm3, %v797_v31 }
 0x255   : > { %v788_v18 = vpop.f32.mrf.mxu3 }
 0x256   : > { %v789_v55 = vadd.f32 %v788_v18, %v358_v43 }
 0x258   : > { %v794_v34 = vmax.f32 %v789_v55, 0.0 }
 0x25a   : > { %v798_v35 = vmax.f32 %v741_v33, %v794_v34 }
 0x25c   : > { %803 = vst.msk [vmem:[%s1276_s7 + $0x18] sm:$0xff] %vm799_vm3, %v798_v35 }
 0x25d PF: > { %s15_s20 = sadd.s32 1, %s1009_s20   ;;  %s1309_s18 = smov %s1005_s19 }
 0x25e   : > { %p12_p5 = scmp.ge.s32.totalorder %s15_s20, 4   ;;  %s1310_s19 = smov %s1312_s21 }
 0x260   :  { %14 = sbr.rel (!%p12_p5) target bundleno = 2 (0x2), region = 77 }

</bundles_post_ra>
